<compile_context>
chip_gen: v6e
topology: v6e:2x2x1
jax: 0.10.0
libtpu: 0.0.40
codegen_flags: <defaults>
</compile_context>

<pallas_src>
import jax
import jax.numpy as jnp
import numpy as np
from jax.experimental import pallas as pl
from jax.experimental.pallas import tpu as pltpu


def _round_up(x, m):
    return ((x + m - 1) // m) * m


def _linear_bias_kernel_acc(x_ref, w_ref, b_ref, o_ref, acc_ref):
    """Multi-K-step path: resident f32 accumulator, bias fused into final store."""
    k = pl.program_id(2)

    @pl.when(k == 0)
    def _():
        acc_ref[...] = jnp.zeros_like(acc_ref)

    # x: (tm, tk), w: (tn, tk)  ->  contract on K (A · Bᵀ), f32 accumulate.
    acc_ref[...] += jax.lax.dot_general(
        x_ref[...], w_ref[...],
        dimension_numbers=(((1,), (1,)), ((), ())),
        preferred_element_type=jnp.float32)

    @pl.when(k == pl.num_programs(2) - 1)
    def _():
        o_ref[...] = (acc_ref[...] + b_ref[...]).astype(o_ref.dtype)


def _linear_bias_kernel_single_k(x_ref, w_ref, b_ref, o_ref):
    """Single-K-step path: no scratch, one fused dot + bias + store."""
    acc = jax.lax.dot_general(
        x_ref[...], w_ref[...],
        dimension_numbers=(((1,), (1,)), ((), ())),
        preferred_element_type=jnp.float32)
    o_ref[...] = (acc + b_ref[...]).astype(o_ref.dtype)


def regression_layer_forward(x, weight, bias, num_nodes, output_dim,
                             *, tm=512, tn=1024, tk=512):
    """Pallas implementation of RegressionLayer.forward.

    x:      (..., input_dim)
    weight: (num_nodes*output_dim, input_dim)   (torch nn.Linear layout, kept native)
    bias:   (num_nodes*output_dim,)
    returns (-1, num_nodes, output_dim)
    """
    in_dim = x.shape[-1]
    xf = x.reshape(-1, in_dim)
    M, K = xf.shape
    N = weight.shape[0]
    assert N == num_nodes * output_dim
    assert weight.shape[1] == K

    b = bias.reshape(1, N)

    # Clamp tiles to the (aligned) problem; M/N edge blocks are masked — no
    # host-side pad, no output slice.
    tm = min(tm, _round_up(M, 8))
    tn = min(tn, _round_up(N, 128))

    # K handling: garbage past the K edge would pollute valid outputs, so
    # either take the full K as one block (block dim == full array dim is
    # always legal) or zero-pad K to an exact multiple of tk.
    if K <= tk:
        tk = K
        nk = 1
    else:
        Kp = _round_up(K, tk)
        if Kp != K:
            xf = jnp.pad(xf, ((0, 0), (0, Kp - K)))
            weight = jnp.pad(weight, ((0, 0), (0, Kp - K)))
        nk = Kp // tk

    gm = pl.cdiv(M, tm)
    gn = pl.cdiv(N, tn)

    # v7x megacore: make sure the parallel (i, j) grid has >= 2 blocks when
    # the problem allows it, so both TensorCores get work.
    if gm * gn < 2 and N > 128:
        tn = _round_up(pl.cdiv(N, 2), 128)
        gn = pl.cdiv(N, tn)

    grid = (gm, gn, nk)

    if nk > 1:
        kernel = _linear_bias_kernel_acc
        scratch_shapes = [pltpu.VMEM((tm, tn), jnp.float32)]
    else:
        kernel = _linear_bias_kernel_single_k
        scratch_shapes = []

    out = pl.pallas_call(
        kernel,
        out_shape=jax.ShapeDtypeStruct((M, N), x.dtype),
        grid_spec=pltpu.PrefetchScalarGridSpec(
            num_scalar_prefetch=0,
            grid=grid,
            in_specs=[
                pl.BlockSpec((tm, tk), lambda i, j, k: (i, k)),   # X tiles
                pl.BlockSpec((tn, tk), lambda i, j, k: (j, k)),   # W tiles, native (N, K)
                pl.BlockSpec((1, tn), lambda i, j, k: (0, j)),    # bias tile
            ],
            out_specs=pl.BlockSpec((tm, tn), lambda i, j, k: (i, j)),
            scratch_shapes=scratch_shapes,
        ),
        compiler_params=pltpu.CompilerParams(
            dimension_semantics=("parallel", "parallel", "arbitrary"),
            vmem_limit_bytes=32 * 1024 * 1024),
    )(xf, weight, b)

    return out.reshape(-1, num_nodes, output_dim)


if __name__ == "__main__":
    key = jax.random.PRNGKey(0)

    # --- Test 1: module-typical small shapes (single-K-step fast path) -----
    batch, input_dim, num_nodes, output_dim = 2, 32, 16, 8
    kx, kw, kb = jax.random.split(key, 3)
    x = jax.random.normal(kx, (batch, input_dim), dtype=jnp.float32)
    # nn.Linear parameter layout: weight (out_features, in_features), bias (out,)
    weight = jax.random.normal(
        kw, (num_nodes * output_dim, input_dim), dtype=jnp.float32
    ) / jnp.sqrt(input_dim)
    bias = jax.random.normal(kb, (num_nodes * output_dim,), dtype=jnp.float32)

    out = jax.block_until_ready(
        regression_layer_forward(x, weight, bias, num_nodes, output_dim))
    ref = (x @ weight.T + bias).reshape(-1, num_nodes, output_dim)
    assert out.shape == (batch, num_nodes, output_dim), out.shape
    np.testing.assert_allclose(np.asarray(out), np.asarray(ref),
                               rtol=1e-4, atol=1e-4)

    # --- Test 2: exercise the multi-K accumulator path + partial M block ---
    batch2, input_dim2, num_nodes2, output_dim2 = 4, 256, 16, 8
    k2x, k2w, k2b = jax.random.split(jax.random.PRNGKey(1), 3)
    x2 = jax.random.normal(k2x, (batch2, input_dim2), dtype=jnp.float32)
    weight2 = jax.random.normal(
        k2w, (num_nodes2 * output_dim2, input_dim2), dtype=jnp.float32
    ) / jnp.sqrt(input_dim2)
    bias2 = jax.random.normal(k2b, (num_nodes2 * output_dim2,), dtype=jnp.float32)

    out2 = jax.block_until_ready(
        regression_layer_forward(x2, weight2, bias2, num_nodes2, output_dim2,
                                 tk=128))
    ref2 = (x2 @ weight2.T + bias2).reshape(-1, num_nodes2, output_dim2)
    assert out2.shape == (batch2, num_nodes2, output_dim2), out2.shape
    np.testing.assert_allclose(np.asarray(out2), np.asarray(ref2),
                               rtol=1e-4, atol=1e-4)

    print("KERNEL_OK")
</pallas_src>

<mosaic_0001>
module attributes {stable_mosaic.version = 11 : i64} {
  func.func @_linear_bias_kernel_single_k(%arg0: i32, %arg1: i32, %arg2: i32, %arg3: memref<8x32xf32, #tpu.memory_space<vmem>>, %arg4: memref<128x32xf32, #tpu.memory_space<vmem>>, %arg5: memref<1x128xf32, #tpu.memory_space<vmem>>, %arg6: memref<8x128xf32, #tpu.memory_space<vmem>>) attributes {dimension_semantics = [#tpu.dimension_semantics<parallel>, #tpu.dimension_semantics<parallel>, #tpu.dimension_semantics<arbitrary>], iteration_bounds = array<i64: 1, 1, 1>, scalar_prefetch = 0 : i64, scratch_operands = 0 : i64, tpu.core_type = #tpu.core_type<tc>, window_params = [{transform_indices = @transform_0, window_bounds = array<i64: 8, 32>}, {transform_indices = @transform_1, window_bounds = array<i64: 128, 32>}, {transform_indices = @transform_2, window_bounds = array<i64: 1, 128>}, {transform_indices = @transform_3, window_bounds = array<i64: 8, 128>}]} {
    %c0 = arith.constant 0 : index
    %c0_0 = arith.constant 0 : index
    %0 = vector.load %arg3[%c0, %c0_0] : memref<8x32xf32, #tpu.memory_space<vmem>>, vector<8x32xf32>
    %c0_1 = arith.constant 0 : index
    %c0_2 = arith.constant 0 : index
    %1 = vector.load %arg4[%c0_1, %c0_2] : memref<128x32xf32, #tpu.memory_space<vmem>>, vector<128x32xf32>
    %cst = arith.constant dense<0.000000e+00> : vector<8x128xf32>
    %2 = tpu.matmul %0, %1, %cst {dimension_numbers = #tpu.dot_dimension_numbers<[1], [1], [0], [0], [0, 0, 1, 0], [], []>} : vector<8x32xf32>, vector<128x32xf32>, vector<8x128xf32> -> vector<8x128xf32>
    %c0_3 = arith.constant 0 : index
    %c0_4 = arith.constant 0 : index
    %3 = vector.load %arg5[%c0_3, %c0_4] : memref<1x128xf32, #tpu.memory_space<vmem>>, vector<1x128xf32>
    %4 = vector.broadcast %3 : vector<1x128xf32> to vector<8x128xf32>
    %5 = arith.addf %2, %4 : vector<8x128xf32>
    %c0_5 = arith.constant 0 : index
    %c0_6 = arith.constant 0 : index
    %6 = vector.load %arg6[%c0_5, %c0_6] : memref<8x128xf32, #tpu.memory_space<vmem>>, vector<8x128xf32>
    tpu.vector_store %arg6[%c0_5, %c0_6], %5 {strides = array<i32>} : memref<8x128xf32, #tpu.memory_space<vmem>>, vector<8x128xf32>,
    return
  }
  func.func @transform_0(%arg0: i32, %arg1: i32, %arg2: i32) -> (i32, i32) {
    %c0_i32 = arith.constant 0 : i32
    return %arg0, %arg2 : i32, i32
  }
  func.func @transform_1(%arg0: i32, %arg1: i32, %arg2: i32) -> (i32, i32) {
    %c0_i32 = arith.constant 0 : i32
    return %arg1, %arg2 : i32, i32
  }
  func.func @transform_2(%arg0: i32, %arg1: i32, %arg2: i32) -> (i32, i32) {
    %c0_i32 = arith.constant 0 : i32
    %c0_i32_0 = arith.constant 0 : i32
    return %c0_i32, %arg1 : i32, i32
  }
  func.func @transform_3(%arg0: i32, %arg1: i32, %arg2: i32) -> (i32, i32) {
    %c0_i32 = arith.constant 0 : i32
    return %arg0, %arg1 : i32, i32
  }
}

</mosaic_0001>

<bundles_post_ra>
// kernel: tpu_custom_call.1
= control target key start
LH: loop header
LB: loop body
LE: loop exit
PB: predicated region body
PF: predicated region fallthrough
CT: control target
= control target key end

     0   :  { %8 = vsyncpa [#allocation3], 0  ;;  %vm39_vm0 = vcmask 261120   ;;  %v275_v1 = vmov 0.0   ;;  %vm276_vm1 = vmmov 0   ;;  %s374_s0 = inlined_call_operand.vmem [shape: f32[2,32], index: 0, kind: input, shape index: {}]   ;;  %s375_s1 = inlined_call_operand.vmem [shape: f32[128,32], index: 1, kind: input, shape index: {}]   ;;  %s376_s2 = inlined_call_operand.vmem [shape: f32[1,128], index: 2, kind: input, shape index: {}]   ;;  %s377_s3 = inlined_call_operand.hbm [shape: f32[2,128], index: 3, kind: output, shape index: {}]  }
   0x1   :  { %v31_v0 = vld [vmem:[%s375_s1 + $0x78] sm:$0xff]  ;;  %213 = vmatprep.subr.mxu0 %v275_v1  ;;  %245 = vmatprep.mubr.msk.f32.mxu0 %vm276_vm1, %v275_v1  ;;  %v30_v2 = vld [vmem:[%s375_s1 + $0x70] sm:$0xff]  ;;  %v29_v3 = vld [vmem:[%s375_s1 + $0x68] sm:$0xff] }
   0x2   :  { %214 = vmatpush3.xpose.msk.msra.mxu0 %vm39_vm0, %v31_v0  ;;  %v28_v4 = vld [vmem:[%s375_s1 + $0x60] sm:$0xff]  ;;  %v27_v5 = vld [vmem:[%s375_s1 + $0x58] sm:$0xff]  ;;  %v26_v6 = vld [vmem:[%s375_s1 + $0x50] sm:$0xff] }
   0x3   :  { %215 = vmatprep.subr.mxu0 %v275_v1  ;;  %v25_v7 = vld [vmem:[%s375_s1 + $0x48] sm:$0xff]  ;;  %v24_v8 = vld [vmem:[%s375_s1 + $0x40] sm:$0xff]  ;;  %v23_v9 = vld [vmem:[%s375_s1 + $0x38] sm:$0xff] }
   0x4   :  { %v22_v10 = vld [vmem:[%s375_s1 + $0x30] sm:$0xff]  ;;  %v21_v11 = vld [vmem:[%s375_s1 + $0x28] sm:$0xff]  ;;  %v20_v12 = vld [vmem:[%s375_s1 + $0x20] sm:$0xff] }
   0x5   :  { %v19_v13 = vld [vmem:[%s375_s1 + $0x18] sm:$0xff]  ;;  %v18_v14 = vld [vmem:[%s375_s1 + $0x10] sm:$0xff]  ;;  %v17_v15 = vld [vmem:[%s375_s1 + $0x8] sm:$0xff] }
   0x6   :  { %216 = vmatpush3.xpose.msk.msra.mxu0 %vm39_vm0, %v30_v2  ;;  %v16_v16 = vld [vmem:[%s375_s1] sm:$0xff] }
   0x7   :  { %217 = vmatprep.subr.mxu0 %v275_v1  ;;  %v15_v17 = vld [vmem:[%s374_s0] sm:$0xff] }
   0x8   :  { %v178_v18 = vld [vmem:[%s376_s2] ss:$0 sm:$0xff] }
   0xa   :  { %218 = vmatpush3.xpose.msk.msra.mxu0 %vm39_vm0, %v29_v3 }
   0xb   :  { %219 = vmatprep.subr.mxu0 %v275_v1 }
   0xe   :  { %220 = vmatpush3.xpose.msk.msra.mxu0 %vm39_vm0, %v28_v4 }
   0xf   :  { %221 = vmatprep.subr.mxu0 %v275_v1 }
  0x12   :  { %222 = vmatpush3.xpose.msk.msra.mxu0 %vm39_vm0, %v27_v5 }
  0x13   :  { %223 = vmatprep.subr.mxu0 %v275_v1 }
  0x16   :  { %224 = vmatpush3.xpose.msk.msra.mxu0 %vm39_vm0, %v26_v6 }
  0x17   :  { %225 = vmatprep.subr.mxu0 %v275_v1 }
  0x1a   :  { %226 = vmatpush3.xpose.msk.msra.mxu0 %vm39_vm0, %v25_v7 }
  0x1b   :  { %227 = vmatprep.subr.mxu0 %v275_v1 }
  0x1e   :  { %228 = vmatpush3.xpose.msk.msra.mxu0 %vm39_vm0, %v24_v8 }
  0x1f   :  { %229 = vmatprep.subr.mxu0 %v275_v1 }
  0x22   :  { %230 = vmatpush3.xpose.msk.msra.mxu0 %vm39_vm0, %v23_v9 }
  0x23   :  { %231 = vmatprep.subr.mxu0 %v275_v1 }
  0x26   :  { %232 = vmatpush3.xpose.msk.msra.mxu0 %vm39_vm0, %v22_v10 }
  0x27   :  { %233 = vmatprep.subr.mxu0 %v275_v1 }
  0x2a   :  { %234 = vmatpush3.xpose.msk.msra.mxu0 %vm39_vm0, %v21_v11 }
  0x2b   :  { %235 = vmatprep.subr.mxu0 %v275_v1 }
  0x2e   :  { %236 = vmatpush3.xpose.msk.msra.mxu0 %vm39_vm0, %v20_v12 }
  0x2f   :  { %237 = vmatprep.subr.mxu0 %v275_v1 }
  0x32   :  { %238 = vmatpush3.xpose.msk.msra.mxu0 %vm39_vm0, %v19_v13 }
  0x33   :  { %239 = vmatprep.subr.mxu0 %v275_v1 }
  0x36   :  { %240 = vmatpush3.xpose.msk.msra.mxu0 %vm39_vm0, %v18_v14 }
  0x37   :  { %241 = vmatprep.subr.mxu0 %v275_v1 }
  0x3a   :  { %242 = vmatpush3.xpose.msk.msra.mxu0 %vm39_vm0, %v17_v15 }
  0x3b   :  { %243 = vmatprep.subr.mxu0 %v275_v1 }
  0x3e   :  { %244 = vmatpush3.xpose.msk.msra.mxu0 %vm39_vm0, %v16_v16 }
  0x41   :  { %246 = vmatmul.mubr.msk.f32.vlgmr.msra.gmra.mxu0 %vm39_vm0, %v15_v17 }
 0x101   :  { %v157_v19 = vpop.f32.mrf.mxu0 }
 0x102   :  { %v158_v20 = vadd.f32 %v178_v18, %v157_v19 }
 0x103   :  { %v247_v21 = vpop.f32.mrf.mxu0 }
 0x104   :  { %161 = vst [vmem:[#allocation2] sm:$0xff] %v158_v20 }
 0x105   :  { %166 = vsyncadd [#allocation3], 96  ;;  %s277_s21 = smov [#allocation2]  }
 0x106   :  { %s167_s22 = sshll.u32 %s277_s21, 4  ;;  %s168_s22 = int_to_ptr.vmem [resolvable:$true] %s167_s22 }
 0x107   :  { %s253_s1 = scalar_lea.vmem %s168_s22, 32  ;;  %s257_s23 = scalar_lea.vmem %s168_s22, 128 }
 0x108   :  { %p254_p0 = scmp.ne.s32.totalorder %s168_s22, %s253_s1  ;;  %p258_p1 = scmp.lt.s32.totalorder %s168_s22, %s168_s22 }
 0x109   :  { %p259_p2 = scmp.lt.s32.totalorder %s257_s23, %s253_s1 }
 0x10b   :  { %p260_p3 = por %p259_p2, %p258_p1 }
 0x10d   :  { %p261_p4 = pnand %p260_p3, %p254_p0 }
 0x10f   :  { %264 = shalt.err (!%p261_p4)
}
 0x110   :  { %s278_s0 = smov 32   ;;  %s279_s24 = smov 2  }
 0x111   :  { %173 = dma.vmem_to_hbm [thread:$0]  %s168_s22, 32, %s377_s3, [#allocation3], %s278_s0, %s278_s0, %s279_s24  }
 0x112   :  { %273 = dma.done.wait [#allocation3], 128  }
 0x113   :  { %274 = vsyncadd [#allocation3], 4294967168 }
 0x114   :  { %177 = vsyncpa [#allocation3], 1 }

</bundles_post_ra>
